<compile_context>
chip_gen: v7x
topology: tpu7x:2x2x1
jax: 0.10.0
libtpu: 0.0.40
codegen_flags: <defaults>
</compile_context>

<pallas_src>
import jax
import jax.numpy as jnp
from jax.experimental import pallas as pl
from jax.experimental.pallas import tpu as pltpu

K_REAL = 28 * 28                     # 784, streamed unpadded
H_REAL, H_PAD = 64, 128
C_REAL, C_PAD = 10, 128
NEG_BIG = -1e30                      # bias for padded logit columns


def _round_up(n, m):
    return ((n + m - 1) // m) * m


def _pick_block_b(B):
    """Batch tile size.

    - Large tiles amortize the ~0.35 us per-grid-step overhead.
    - Cap at 2048 rows: 2 x 2048 x 784 x 4 B ~= 12.8 MiB double-buffered f32
      input, comfortably inside v7x's 64 MiB VMEM (and v5e/v6e's 128 MiB).
    - For larger batches, cap at ceil(B/2) so there are >= 2 grid steps and
      the "parallel" axis can shard across both v7x TensorCores.
    """
    MAX_TB = 2048
    if B <= 64:
        return B                                     # one block == full batch dim (always legal)
    return min(MAX_TB, _round_up(pl.cdiv(B, 2), 8))  # >= 2 grid steps


def mlp_log_softmax_kernel(x_ref, w1_ref, b1_ref, w2_ref, b2_ref, o_ref):
    """Fused: Linear -> ReLU -> (Dropout=id) -> Linear -> log_softmax.

    x_ref:  (TB, 784) f32      w1_ref: (784, 128) bf16   b1_ref: (1, 128) f32
    w2_ref: (128, 128) bf16    b2_ref: (1, 128)  f32     o_ref:  (TB, 10) f32
    """
    # In-VMEM bf16 cast of the streamed activations (no extra HBM pass).
    x = x_ref[...].astype(jnp.bfloat16)                       # (TB, 784)

    # Linear(784 -> 64), hidden lane-padded to 128: bf16 MXU, f32 accumulate.
    h = jnp.dot(x, w1_ref[...], preferred_element_type=jnp.float32)
    h = jnp.maximum(h + b1_ref[...], 0.0)                     # (TB, 128) f32
    # Padded hidden columns are exactly zero (zero w1 cols, zero b1 pad).

    # TODO(synk): Dropout(p=0.1) is identity here (eval-mode forward); training
    # mode would use pltpu.prng_seed / pltpu.stateful_bernoulli with 1/(1-p).

    # Linear(64 -> 10), class lane-padded to 128 (zero pad rows/cols).
    logits = jnp.dot(h.astype(jnp.bfloat16), w2_ref[...],
                     preferred_element_type=jnp.float32)
    logits = logits + b2_ref[...]                             # pad cols -> ~-1e30

    # Numerically stable log_softmax over the padded class axis.  Padded
    # columns sit at ~-1e30, so exp() contributes 0 and the result for the
    # real 10 classes equals a 10-wide log_softmax.
    m = jnp.max(logits, axis=-1, keepdims=True)
    z = logits - m
    lse = jnp.log(jnp.sum(jnp.exp(z), axis=-1, keepdims=True))

    # Store only the 10 real classes (masked store; HBM bytes dominate here).
    o_ref[...] = (z - lse)[:, :C_REAL]


def neural_net_forward(x_nchw, w1, b1, w2, b2, *, block_b=None):
    """x_nchw: (B, 1, 28, 28) float32 -> (B, 10) float32 log-probabilities."""
    B = x_nchw.shape[0]
    x2d = x_nchw.reshape(B, K_REAL)            # nn.Flatten: layout-preserving, no copy
    if x2d.dtype != jnp.float32:
        x2d = x2d.astype(jnp.float32)

    # --- resident parameters: pad/cast once (tiny, ~0.2 MiB total) ----------
    w1_p = jnp.pad(w1, ((0, 0), (0, H_PAD - H_REAL))).astype(jnp.bfloat16)       # (784, 128)
    b1_p = jnp.pad(b1, (0, H_PAD - H_REAL)).reshape(1, H_PAD).astype(jnp.float32)
    w2_p = jnp.pad(w2, ((0, H_PAD - H_REAL), (0, C_PAD - C_REAL))
                   ).astype(jnp.bfloat16)                                        # (128, 128)
    b2_p = jnp.pad(b2, (0, C_PAD - C_REAL),
                   constant_values=NEG_BIG).reshape(1, C_PAD).astype(jnp.float32)

    # --- batch tiling (no explicit padding; ragged last tile is fine) -------
    if block_b is None:
        block_b = _pick_block_b(B)
    grid = (pl.cdiv(B, block_b),)

    out = pl.pallas_call(
        mlp_log_softmax_kernel,
        out_shape=jax.ShapeDtypeStruct((B, C_REAL), jnp.float32),
        grid=grid,
        in_specs=[
            pl.BlockSpec((block_b, K_REAL), lambda i: (i, 0)),   # streamed x (f32, unpadded)
            pl.BlockSpec((K_REAL, H_PAD), lambda i: (0, 0)),     # resident w1
            pl.BlockSpec((1, H_PAD), lambda i: (0, 0)),          # resident b1
            pl.BlockSpec((H_PAD, C_PAD), lambda i: (0, 0)),      # resident w2
            pl.BlockSpec((1, C_PAD), lambda i: (0, 0)),          # resident b2
        ],
        out_specs=pl.BlockSpec((block_b, C_REAL), lambda i: (i, 0)),
        compiler_params=pltpu.CompilerParams(
            dimension_semantics=("parallel",),
            vmem_limit_bytes=32 << 20,        # actual need ~14 MiB; headroom on v7x's 64 MiB
        ),
    )(x2d, w1_p, b1_p, w2_p, b2_p)

    return out                                # already (B, 10); no post-call slice


def reference_forward_f32(x_nchw, w1, b1, w2, b2):
    """Pure-JAX f32 reference (module semantics)."""
    B = x_nchw.shape[0]
    x = x_nchw.reshape(B, K_REAL)
    h = jnp.maximum(x @ w1 + b1, 0.0)
    logits = h @ w2 + b2
    return jax.nn.log_softmax(logits, axis=1)


def reference_forward_bf16(x_nchw, w1, b1, w2, b2):
    """Pure-JAX reference matching the kernel's bf16-input / f32-accum path."""
    B = x_nchw.shape[0]
    x = x_nchw.reshape(B, K_REAL).astype(jnp.bfloat16)
    h = jnp.dot(x, w1.astype(jnp.bfloat16),
                preferred_element_type=jnp.float32) + b1
    h = jnp.maximum(h, 0.0)
    logits = jnp.dot(h.astype(jnp.bfloat16), w2.astype(jnp.bfloat16),
                     preferred_element_type=jnp.float32) + b2
    return jax.nn.log_softmax(logits, axis=1)


if __name__ == "__main__":
    key = jax.random.PRNGKey(0)
    k_x, k_w1, k_b1, k_w2, k_b2 = jax.random.split(key, 5)

    B = 8  # small batch; kernel tiles/pipelines automatically for large B

    # Deterministic synthetic parameters (shapes from NeuralNet.__init__):
    #   Linear(784, 64): W1 (784, 64), b1 (64,)
    #   Linear(64, 10):  W2 (64, 10),  b2 (10,)
    x = jax.random.normal(k_x, (B, 1, 28, 28), dtype=jnp.float32)
    w1 = jax.random.normal(k_w1, (K_REAL, H_REAL), dtype=jnp.float32) * 0.05
    b1 = jax.random.normal(k_b1, (H_REAL,), dtype=jnp.float32) * 0.05
    w2 = jax.random.normal(k_w2, (H_REAL, C_REAL), dtype=jnp.float32) * 0.05
    b2 = jax.random.normal(k_b2, (C_REAL,), dtype=jnp.float32) * 0.05

    out = neural_net_forward(x, w1, b1, w2, b2)
    out = jax.block_until_ready(out)
    assert out.shape == (B, C_REAL)

    # Tight check against a reference following the same bf16-in/f32-acc path.
    ref_bf16 = reference_forward_bf16(x, w1, b1, w2, b2)
    assert jnp.allclose(out, ref_bf16, atol=2e-3, rtol=2e-3), \
        "mismatch vs bf16-path reference"

    # Loose sanity check against the pure-f32 module semantics + class agreement.
    ref_f32 = reference_forward_f32(x, w1, b1, w2, b2)
    assert jnp.allclose(out, ref_f32, atol=1e-1, rtol=1e-2), \
        "mismatch vs f32 reference"
    assert jnp.all(jnp.argmax(out, axis=1) == jnp.argmax(ref_f32, axis=1)), \
        "argmax class mismatch vs f32 reference"

    # log_softmax rows must sum to ~1 in prob space.
    assert jnp.allclose(jnp.sum(jnp.exp(out), axis=1), 1.0, atol=1e-5)

    print("KERNEL_OK")
</pallas_src>

<mosaic_0001>
module attributes {stable_mosaic.version = 11 : i64} {
  func.func @mlp_log_softmax_kernel(%arg0: i32, %arg1: memref<8x784xf32, #tpu.memory_space<vmem>>, %arg2: memref<784x128xbf16, #tpu.memory_space<vmem>>, %arg3: memref<1x128xf32, #tpu.memory_space<vmem>>, %arg4: memref<128x128xbf16, #tpu.memory_space<vmem>>, %arg5: memref<1x128xf32, #tpu.memory_space<vmem>>, %arg6: memref<8x10xf32, #tpu.memory_space<vmem>>) attributes {dimension_semantics = [#tpu.dimension_semantics<parallel>], iteration_bounds = array<i64: 1>, scalar_prefetch = 0 : i64, scratch_operands = 0 : i64, tpu.core_type = #tpu.core_type<tc>, window_params = [{transform_indices = @transform_0, window_bounds = array<i64: 8, 784>}, {pipeline_mode = #tpu.pipeline_mode<synchronous>, transform_indices = @transform_1, window_bounds = array<i64: 784, 128>}, {pipeline_mode = #tpu.pipeline_mode<synchronous>, transform_indices = @transform_2, window_bounds = array<i64: 1, 128>}, {pipeline_mode = #tpu.pipeline_mode<synchronous>, transform_indices = @transform_3, window_bounds = array<i64: 128, 128>}, {pipeline_mode = #tpu.pipeline_mode<synchronous>, transform_indices = @transform_4, window_bounds = array<i64: 1, 128>}, {transform_indices = @transform_5, window_bounds = array<i64: 8, 10>}]} {
    %c0 = arith.constant 0 : index
    %c0_0 = arith.constant 0 : index
    %0 = vector.load %arg1[%c0, %c0_0] : memref<8x784xf32, #tpu.memory_space<vmem>>, vector<8x784xf32>
    %1 = arith.truncf %0 : vector<8x784xf32> to vector<8x784xbf16>
    %c0_1 = arith.constant 0 : index
    %c0_2 = arith.constant 0 : index
    %2 = vector.load %arg2[%c0_1, %c0_2] : memref<784x128xbf16, #tpu.memory_space<vmem>>, vector<784x128xbf16>
    %cst = arith.constant dense<0.000000e+00> : vector<8x128xf32>
    %3 = tpu.matmul %1, %2, %cst {dimension_numbers = #tpu.dot_dimension_numbers<[1], [0], [0], [1], [0, 0, 1, 1], [], []>} : vector<8x784xbf16>, vector<784x128xbf16>, vector<8x128xf32> -> vector<8x128xf32>
    %c0_3 = arith.constant 0 : index
    %c0_4 = arith.constant 0 : index
    %4 = vector.load %arg3[%c0_3, %c0_4] : memref<1x128xf32, #tpu.memory_space<vmem>>, vector<1x128xf32>
    %5 = vector.broadcast %4 : vector<1x128xf32> to vector<8x128xf32>
    %6 = arith.addf %3, %5 : vector<8x128xf32>
    %cst_5 = arith.constant 0.000000e+00 : f32
    %7 = vector.broadcast %cst_5 : f32 to vector<8x128xf32>
    %8 = arith.maximumf %6, %7 : vector<8x128xf32>
    %9 = arith.truncf %8 : vector<8x128xf32> to vector<8x128xbf16>
    %c0_6 = arith.constant 0 : index
    %c0_7 = arith.constant 0 : index
    %10 = vector.load %arg4[%c0_6, %c0_7] : memref<128x128xbf16, #tpu.memory_space<vmem>>, vector<128x128xbf16>
    %cst_8 = arith.constant dense<0.000000e+00> : vector<8x128xf32>
    %11 = tpu.matmul %9, %10, %cst_8 {dimension_numbers = #tpu.dot_dimension_numbers<[1], [0], [0], [1], [0, 0, 1, 1], [], []>} : vector<8x128xbf16>, vector<128x128xbf16>, vector<8x128xf32> -> vector<8x128xf32>
    %c0_9 = arith.constant 0 : index
    %c0_10 = arith.constant 0 : index
    %12 = vector.load %arg5[%c0_9, %c0_10] : memref<1x128xf32, #tpu.memory_space<vmem>>, vector<1x128xf32>
    %13 = vector.broadcast %12 : vector<1x128xf32> to vector<8x128xf32>
    %14 = arith.addf %11, %13 : vector<8x128xf32>
    %cst_11 = arith.constant dense<0xFF800000> : vector<8xf32>
    %15 = vector.multi_reduction <maximumf>, %14, %cst_11 [1] : vector<8x128xf32> to vector<8xf32>
    %16 = vector.shape_cast %15 : vector<8xf32> to vector<8x1xf32>
    %17 = vector.broadcast %16 : vector<8x1xf32> to vector<8x128xf32>
    %18 = arith.subf %14, %17 : vector<8x128xf32>
    %19 = math.exp %18 : vector<8x128xf32>
    %cst_12 = arith.constant dense<0.000000e+00> : vector<8xf32>
    %20 = vector.multi_reduction <add>, %19, %cst_12 [1] : vector<8x128xf32> to vector<8xf32>
    %21 = vector.shape_cast %20 : vector<8xf32> to vector<8x1xf32>
    %22 = math.log %21 : vector<8x1xf32>
    %23 = vector.broadcast %22 : vector<8x1xf32> to vector<8x128xf32>
    %24 = arith.subf %18, %23 : vector<8x128xf32>
    %25 = vector.extract_strided_slice %24 {offsets = [0, 0], sizes = [8, 10], strides = [1, 1]} : vector<8x128xf32> to vector<8x10xf32>
    %c0_13 = arith.constant 0 : index
    %c0_14 = arith.constant 0 : index
    %26 = vector.load %arg6[%c0_13, %c0_14] : memref<8x10xf32, #tpu.memory_space<vmem>>, vector<8x10xf32>
    tpu.vector_store %arg6[%c0_13, %c0_14], %25 {strides = array<i32>} : memref<8x10xf32, #tpu.memory_space<vmem>>, vector<8x10xf32>,
    return
  }
  func.func @transform_0(%arg0: i32) -> (i32, i32) {
    %c0_i32 = arith.constant 0 : i32
    %c0_i32_0 = arith.constant 0 : i32
    return %arg0, %c0_i32 : i32, i32
  }
  func.func @transform_1(%arg0: i32) -> (i32, i32) {
    %c0_i32 = arith.constant 0 : i32
    %c0_i32_0 = arith.constant 0 : i32
    %c0_i32_1 = arith.constant 0 : i32
    return %c0_i32, %c0_i32_0 : i32, i32
  }
  func.func @transform_2(%arg0: i32) -> (i32, i32) {
    %c0_i32 = arith.constant 0 : i32
    %c0_i32_0 = arith.constant 0 : i32
    %c0_i32_1 = arith.constant 0 : i32
    return %c0_i32, %c0_i32_0 : i32, i32
  }
  func.func @transform_3(%arg0: i32) -> (i32, i32) {
    %c0_i32 = arith.constant 0 : i32
    %c0_i32_0 = arith.constant 0 : i32
    %c0_i32_1 = arith.constant 0 : i32
    return %c0_i32, %c0_i32_0 : i32, i32
  }
  func.func @transform_4(%arg0: i32) -> (i32, i32) {
    %c0_i32 = arith.constant 0 : i32
    %c0_i32_0 = arith.constant 0 : i32
    %c0_i32_1 = arith.constant 0 : i32
    return %c0_i32, %c0_i32_0 : i32, i32
  }
  func.func @transform_5(%arg0: i32) -> (i32, i32) {
    %c0_i32 = arith.constant 0 : i32
    %c0_i32_0 = arith.constant 0 : i32
    return %arg0, %c0_i32 : i32, i32
  }
}

</mosaic_0001>

<bundles_post_ra>
// kernel: tpu_custom_call.1
= control target key start
LH: loop header
LB: loop body
LE: loop exit
PB: predicated region body
PF: predicated region fallthrough
CT: control target
= control target key end

     0   :  { %10 = vsyncpa [#allocation3], 0  ;;  %s1216_s0 = inlined_call_operand.hbm [shape: f32[8,784], index: 0, kind: input, shape index: {}]   ;;  %s1217_s1 = inlined_call_operand.hbm [shape: bf16[784,128], index: 1, kind: input, shape index: {}]   ;;  %s1218_s2 = inlined_call_operand.vmem [shape: f32[1,128], index: 2, kind: input, shape index: {}]   ;;  %s1219_s3 = inlined_call_operand.hbm [shape: bf16[128,128], index: 3, kind: input, shape index: {}]   ;;  %s1220_s4 = inlined_call_operand.vmem [shape: f32[1,128], index: 4, kind: input, shape index: {}]   ;;  %s1221_s5 = inlined_call_operand.hbm [shape: f32[8,10], index: 5, kind: output, shape index: {}]  }
   0x1   :  { %11 = vsyncpa [#allocation6], 0 }
   0x2   :  { %12 = vsyncpa [#allocation4], 0  ;;  %s1105_s18 = smov [#allocation5]   ;;  %s1011_s22 = scalar_lea.hbm %s1217_s1, 6272 }
   0x3   :  { %s28_s19 = sshll.u32 %s1105_s18, 4  ;;  %p1012_p0 = scmp.ne.s32.totalorder %s1217_s1, %s1011_s22  ;;  %s29_s19 = int_to_ptr.vmem [resolvable:$true] %s28_s19 }
   0x4   :  { %p1015_p1 = scmp.lt.u32.totalorder %s1011_s22, %s1217_s1 }
   0x6   :  { %p1017_p2 = pnand %p1015_p1, %p1012_p0 }
   0x8   :  { %1020 = shalt.err (!%p1017_p2)
}
   0x9   :  { %s1021_s27 = scalar_lea.vmem %s29_s19, 6272  ;;  %p1026_p4 = scmp.lt.s32.totalorder %s29_s19, %s29_s19 }
   0xa   :  { %p1022_p3 = scmp.ne.s32.totalorder %s29_s19, %s1021_s27  ;;  %p1027_p5 = scmp.lt.s32.totalorder %s1021_s27, %s1021_s27 }
   0xc   :  { %p1028_p6 = por %p1027_p5, %p1026_p4 }
   0xe   :  { %p1029_p7 = pnand %p1028_p6, %p1022_p3 }
  0x10   :  { %1032 = shalt.err (!%p1029_p7)
}
  0x11   :  { %s1106_s28 = smov 64   ;;  %s1107_s29 = smov 4  }
  0x12   :  { %34 = dma.hbm_to_vmem [thread:$0]  %s1217_s1, 6272, %s29_s19, [#allocation6], %s1106_s28, %s1106_s28, %s1107_s29  }
  0x13   :  { %s1108_s7 = smov [#allocation2]   ;;  %s1109_s9 = smov [#allocation7]  }
  0x14   :  { %s19_s8 = sshll.u32 %s1108_s7, 4  ;;  %s42_s10 = sshll.u32 %s1109_s9, 4  ;;  %s20_s8 = int_to_ptr.vmem [resolvable:$true] %s19_s8  ;;  %s43_s10 = int_to_ptr.vmem [resolvable:$true] %s42_s10 }
  0x15   :  { %s1033_s13 = scalar_lea.hbm %s1216_s0, 896 }
  0x16   :  { %p1034_p8 = scmp.ne.s32.totalorder %s1216_s0, %s1033_s13  ;;  %p1037_p9 = scmp.lt.u32.totalorder %s1033_s13, %s1216_s0 }
  0x18   :  { %p1039_p10 = pnand %p1037_p9, %p1034_p8 }
  0x1a   :  { %1042 = shalt.err (!%p1039_p10)
}
  0x1b   :  { %s1043_s1 = scalar_lea.vmem %s20_s8, 896  ;;  %p1048_p12 = scmp.lt.s32.totalorder %s20_s8, %s20_s8 }
  0x1c   :  { %p1044_p11 = scmp.ne.s32.totalorder %s20_s8, %s1043_s1  ;;  %p1049_p13 = scmp.lt.s32.totalorder %s1043_s1, %s1043_s1 }
  0x1e   :  { %p1050_p0 = por %p1049_p13, %p1048_p12 }
  0x20   :  { %p1051_p1 = pnand %p1050_p0, %p1044_p11 }
  0x22   :  { %1054 = shalt.err (!%p1051_p1)
}
  0x23   :  { %22 = dma.hbm_to_vmem [thread:$0]  %s1216_s0, 896, %s20_s8, [#allocation3]  }
  0x24   :  { %s1055_s22 = scalar_lea.hbm %s1219_s3, 1024 }
  0x25   :  { %p1056_p2 = scmp.ne.s32.totalorder %s1219_s3, %s1055_s22  ;;  %p1059_p3 = scmp.lt.u32.totalorder %s1055_s22, %s1219_s3 }
  0x27   :  { %p1061_p4 = pnand %p1059_p3, %p1056_p2 }
  0x29   :  { %1064 = shalt.err (!%p1061_p4)
}
  0x2a   :  { %s1065_s27 = scalar_lea.vmem %s43_s10, 1024  ;;  %p1070_p6 = scmp.lt.s32.totalorder %s43_s10, %s43_s10 }
  0x2b   :  { %p1066_p5 = scmp.ne.s32.totalorder %s43_s10, %s1065_s27  ;;  %p1071_p7 = scmp.lt.s32.totalorder %s1065_s27, %s1065_s27 }
  0x2d   :  { %p1072_p8 = por %p1071_p7, %p1070_p6 }
  0x2f   :  { %p1073_p9 = pnand %p1072_p8, %p1066_p5 }
  0x31   :  { %1076 = shalt.err (!%p1073_p9)
}
  0x32   :  { %48 = dma.hbm_to_vmem [thread:$0]  %s1219_s3, 1024, %s43_s10, [#allocation6], %s1106_s28, %s1106_s28, %s1107_s29  }
  0x33   :  { %1099 = dma.done.wait [#allocation3], 896  }
  0x34   :  { %1100 = vsyncadd [#allocation3], 4294966400 }
  0x35   :  { %1101 = dma.done.wait [#allocation6], 7296  }
  0x36   :  { %1102 = vsyncadd [#allocation6], 4294960000  ;;  %v950_v0 = vld [vmem:[#allocation5 + $0x40] sm:$0xff]   ;;  %v954_v4 = vld [vmem:[#allocation5 + $0x48] sm:$0xff]   ;;  %v1110_v44 = vmov 0.0   ;;  %vm1111_vm0 = vmmov 0  }
  0x37   :  { %v951_v1 = vld [vmem:[#allocation5] sm:$0xff]   ;;  %839 = vmatprep.subr.bf16.mxu0 %v950_v0  ;;  %v955_v5 = vld [vmem:[#allocation5 + $0x8] sm:$0xff]   ;;  %v958_v8 = vld [vmem:[#allocation5 + $0x50] sm:$0xff]   ;;  %vm474_vm1 = vcmask 130048   ;;  %s1112_s6 = smov [#allocation8]   ;;  %vm761_vm2 = vcmask 80896  }
  0x38   :  { %v952_v2 = vld [vmem:[#allocation5 + $0xc0] sm:$0xff]   ;;  %840 = vmatpush3.bf16.msra.mxu0 %v951_v1  ;;  %v956_v6 = vld [vmem:[#allocation5 + $0xc8] sm:$0xff]   ;;  %v959_v9 = vld [vmem:[#allocation5 + $0x10] sm:$0xff]   ;;  %s769_s7 = sshll.u32 %s1112_s6, 4  ;;  %s770_s7 = int_to_ptr.vmem [resolvable:$true] %s769_s7 }
  0x39   :  { %v953_v3 = vld [vmem:[#allocation5 + $0x80] sm:$0xff]   ;;  %861 = vmatprep.subr.bf16.mxu1 %v952_v2  ;;  %841 = vmatprep.subr.bf16.mxu0 %v954_v4  ;;  %v957_v7 = vld [vmem:[#allocation5 + $0x88] sm:$0xff]   ;;  %v960_v10 = vld [vmem:[#allocation5 + $0xd0] sm:$0xff]   ;;  %p1082_p11 = scmp.lt.s32.totalorder %s770_s7, %s770_s7 }
  0x3a   :  { %862 = vmatpush3.bf16.msra.mxu1 %v953_v3  ;;  %v961_v11 = vld [vmem:[#allocation5 + $0x90] sm:$0xff]   ;;  %v962_v12 = vld [vmem:[#allocation5 + $0x58] sm:$0xff]   ;;  %v966_v16 = vld [vmem:[#allocation5 + $0x60] sm:$0xff]  }
  0x3b   :  { %863 = vmatprep.subr.bf16.mxu1 %v956_v6  ;;  %v963_v13 = vld [vmem:[#allocation5 + $0x18] sm:$0xff]   ;;  %v967_v17 = vld [vmem:[#allocation5 + $0x20] sm:$0xff]   ;;  %v970_v20 = vld [vmem:[#allocation5 + $0x68] sm:$0xff]  }
  0x3c   :  { %842 = vmatpush3.bf16.msra.mxu0 %v955_v5  ;;  %v964_v14 = vld [vmem:[#allocation5 + $0xd8] sm:$0xff]   ;;  %v968_v18 = vld [vmem:[#allocation5 + $0xe0] sm:$0xff]   ;;  %v971_v21 = vld [vmem:[#allocation5 + $0x28] sm:$0xff]  }
  0x3d   :  { %843 = vmatprep.subr.bf16.mxu0 %v958_v8  ;;  %v965_v15 = vld [vmem:[#allocation5 + $0x98] sm:$0xff]   ;;  %v969_v19 = vld [vmem:[#allocation5 + $0xa0] sm:$0xff]   ;;  %v972_v22 = vld [vmem:[#allocation5 + $0xe8] sm:$0xff]  }
  0x3e   :  { %864 = vmatpush3.bf16.msra.mxu1 %v957_v7  ;;  %v973_v23 = vld [vmem:[#allocation5 + $0xa8] sm:$0xff]   ;;  %v974_v24 = vld [vmem:[#allocation5 + $0x70] sm:$0xff]   ;;  %v978_v28 = vld [vmem:[#allocation5 + $0x78] sm:$0xff]  }
  0x3f   :  { %865 = vmatprep.subr.bf16.mxu1 %v960_v10  ;;  %v975_v25 = vld [vmem:[#allocation5 + $0x30] sm:$0xff]   ;;  %v979_v29 = vld [vmem:[#allocation5 + $0x38] sm:$0xff]   ;;  %v61_v34 = vld [vmem:[#allocation2] sm:$0xff] }
  0x40   :  { %844 = vmatpush3.bf16.msra.mxu0 %v959_v9  ;;  %v976_v26 = vld [vmem:[#allocation5 + $0xf0] sm:$0xff]   ;;  %v980_v30 = vld [vmem:[#allocation5 + $0xf8] sm:$0xff]   ;;  %v68_v35 = vpack.c.bf16 %v61_v34, %v61_v34  ;;  %v982_v36 = vld [vmem:[#allocation5 + $0x140] sm:$0xff]  }
  0x41   :  { %845 = vmatprep.subr.bf16.mxu0 %v962_v12  ;;  %v977_v27 = vld [vmem:[#allocation5 + $0xb0] sm:$0xff]   ;;  %v981_v33 = vld [vmem:[#allocation5 + $0xb8] sm:$0xff]   ;;  %v64_v37 = vld [vmem:[#allocation2 + $0x18] sm:$0xff] }
  0x42   :  { %866 = vmatpush3.bf16.msra.mxu1 %v961_v11  ;;  %v62_v31 = vld [vmem:[#allocation2 + $0x8] sm:$0xff]  ;;  %v71_v38 = vpack.c.bf16 %v64_v37, %v64_v37  ;;  %v983_v39 = vld [vmem:[#allocation5 + $0x100] sm:$0xff]   ;;  %v63_v40 = vld [vmem:[#allocation2 + $0x10] sm:$0xff] }
  0x43   :  { %867 = vmatprep.subr.bf16.mxu1 %v964_v14  ;;  %v69_v32 = vpack.c.bf16 %v62_v31, %v62_v31  ;;  %v70_v41 = vpack.c.bf16 %v63_v40, %v63_v40  ;;  %v984_v42 = vld [vmem:[#allocation5 + $0x148] sm:$0xff]   ;;  %v986_v45 = vld [vmem:[#allocation5 + $0x150] sm:$0xff]   ;;  %v988_v47 = vld [vmem:[#allocation5 + $0x158] sm:$0xff]  }
  0x44   :  { %846 = vmatpush3.bf16.msra.mxu0 %v963_v13  ;;  %550 = vmatprep.mubr.bf16.mxu1 %v71_v38  ;;  %v985_v43 = vld [vmem:[#allocation5 + $0x108] sm:$0xff]   ;;  %v987_v46 = vld [vmem:[#allocation5 + $0x110] sm:$0xff]   ;;  %v989_v48 = vld [vmem:[#allocation5 + $0x118] sm:$0xff]  }
  0x45   :  { %847 = vmatprep.subr.bf16.mxu0 %v966_v16  ;;  %510 = vmatprep.mubr.bf16.mxu0 %v69_v32  ;;  %v990_v49 = vld [vmem:[#allocation5 + $0x160] sm:$0xff]   ;;  %v992_v51 = vld [vmem:[#allocation5 + $0x168] sm:$0xff]   ;;  %v66_v54 = vld [vmem:[#allocation2 + $0x28] sm:$0xff] }
  0x46   :  { %868 = vmatpush3.bf16.msra.mxu1 %v965_v15  ;;  %v991_v50 = vld [vmem:[#allocation5 + $0x120] sm:$0xff]   ;;  %v993_v52 = vld [vmem:[#allocation5 + $0x128] sm:$0xff]   ;;  %v994_v55 = vld [vmem:[#allocation5 + $0x170] sm:$0xff]   ;;  %v73_v56 = vpack.c.bf16 %v66_v54, %v66_v54 }
  0x47   :  { %869 = vmatprep.subr.bf16.mxu1 %v968_v18  ;;  %v998_v53 = vld [vmem:[#allocation5 + $0x180] sm:$0xff]   ;;  %v67_v57 = vld [vmem:[#allocation2 + $0x30] sm:$0xff]  ;;  %v995_v59 = vld [vmem:[#allocation5 + $0x130] sm:$0xff]  }
  0x48   :  { %848 = vmatpush3.bf16.msra.mxu0 %v967_v17  ;;  %v74_v58 = vpack.c.bf16 %v67_v57, %v67_v57  ;;  %v996_v60 = vld [vmem:[#allocation5 + $0x178] sm:$0xff]   ;;  %v65_v62 = vld [vmem:[#allocation2 + $0x20] sm:$0xff]  ;;  %v1000_v1 = vld [vmem:[#allocation7 + $0x8] sm:$0xff]  }
  0x49   :  { %849 = vmatprep.subr.bf16.mxu0 %v970_v20  ;;  %v997_v61 = vld [vmem:[#allocation5 + $0x138] sm:$0xff]   ;;  %v72_v63 = vpack.c.bf16 %v65_v62, %v65_v62  ;;  %v999_v0 = vld [vmem:[#allocation7] sm:$0xff]   ;;  %v1002_v3 = vld [vmem:[#allocation7 + $0x18] sm:$0xff]  }
  0x4a   :  { %870 = vmatpush3.bf16.msra.mxu1 %v969_v19  ;;  %v1001_v2 = vld [vmem:[#allocation7 + $0x10] sm:$0xff]   ;;  %v1003_v4 = vld [vmem:[#allocation7 + $0x20] sm:$0xff]   ;;  %v1004_v5 = vld [vmem:[#allocation7 + $0x28] sm:$0xff]  }
  0x4b   :  { %871 = vmatprep.subr.bf16.mxu1 %v972_v22  ;;  %v1005_v6 = vld [vmem:[#allocation7 + $0x30] sm:$0xff]   ;;  %v1006_v7 = vld [vmem:[#allocation7 + $0x38] sm:$0xff]   ;;  %v779_v9 = vld [vmem:[%s1218_s2] ss:$0 sm:$0xff] }
  0x4c   :  { %850 = vmatpush3.bf16.msra.mxu0 %v971_v21  ;;  %v830_v34 = vld [vmem:[%s1220_s4] ss:$0 sm:$0xff]  ;;  %s1077_s4 = scalar_lea.vmem %s770_s7, 128 }
  0x4d   :  { %851 = vmatprep.subr.bf16.mxu0 %v974_v24  ;;  %p1078_p10 = scmp.ne.s32.totalorder %s770_s7, %s1077_s4  ;;  %p1083_p12 = scmp.lt.s32.totalorder %s1077_s4, %s1077_s4 }
  0x4e   :  { %872 = vmatpush3.bf16.msra.mxu1 %v973_v23 }
  0x4f   :  { %873 = vmatprep.subr.bf16.mxu1 %v976_v26  ;;  %p1084_p13 = por %p1083_p12, %p1082_p11 }
  0x50   :  { %852 = vmatpush3.bf16.msra.mxu0 %v975_v25 }
  0x51   :  { %853 = vmatprep.subr.bf16.mxu0 %v978_v28  ;;  %p1085_p0 = pnand %p1084_p13, %p1078_p10 }
  0x52   :  { %874 = vmatpush3.bf16.msra.mxu1 %v977_v27 }
  0x53   :  { %875 = vmatprep.subr.bf16.mxu1 %v980_v30 }
  0x54   :  { %854 = vmatpush3.bf16.msra.mxu0 %v979_v29 }
  0x55   :  { %883 = vmatprep.subr.bf16.mxu0 %v982_v36 }
  0x56   :  { %876 = vmatpush3.bf16.msra.mxu1 %v981_v33 }
  0x57   :  { %511 = vmatmul.mubr.bf16.vlgmr.msra.gmra.mrb[0].mxu0 %v68_v35  ;;  %916 = vmatprep.subr.bf16.mxu1 %v1110_v44 }
  0x58   :  { %884 = vmatpush3.bf16.msra.mxu0 %v983_v39  ;;  %590 = vmatprep.mubr.bf16.mxu0 %v73_v56 }
  0x59   :  { %551 = vmatmul.mubr.bf16.vlgmr.msra.gmra.mrb[0].mxu1 %v70_v41  ;;  %885 = vmatprep.subr.bf16.mxu0 %v984_v42 }
  0x5a   :  { %918 = vmatprep.mubr.msk.bf16.mxu1 %vm1111_vm0, %v1110_v44  ;;  %917 = vmatpush3.bf16.msra.mxu1 %v998_v53 }
  0x5b   :  { %922 = vmatprep.subr.bf16.mxu1 %v1110_v44 }
  0x5c   :  { %886 = vmatpush3.bf16.msra.mxu0 %v985_v43 }
  0x5d   :  { %887 = vmatprep.subr.bf16.mxu0 %v986_v45 }
  0x60   :  { %888 = vmatpush3.bf16.msra.mxu0 %v987_v46 }
  0x61   :  { %889 = vmatprep.subr.bf16.mxu0 %v988_v47  ;;  %919 = vmatmul.mubr.msk.bf16.vlgmr.msra.gmra.mrb[4].mxu1 %vm474_vm1, %v74_v58 }
  0x62   :  { %938 = vmatprep.mubr.msk.bf16.mxu1 %vm1111_vm0, %v1110_v44  ;;  %923 = vmatpush3.bf16.msra.mxu1 %v999_v0 }
  0x63   :  { %924 = vmatprep.subr.bf16.mxu1 %v1110_v44 }
  0x64   :  { %890 = vmatpush3.bf16.msra.mxu0 %v989_v48 }
  0x65   :  { %891 = vmatprep.subr.bf16.mxu0 %v990_v49 }
  0x66   :  { %925 = vmatpush3.bf16.msra.mxu1 %v1000_v1 }
  0x67   :  { %926 = vmatprep.subr.bf16.mxu1 %v1110_v44 }
  0x68   :  { %892 = vmatpush3.bf16.msra.mxu0 %v991_v50 }
  0x69   :  { %893 = vmatprep.subr.bf16.mxu0 %v992_v51 }
  0x6a   :  { %927 = vmatpush3.bf16.msra.mxu1 %v1001_v2 }
  0x6b   :  { %928 = vmatprep.subr.bf16.mxu1 %v1110_v44 }
  0x6c   :  { %894 = vmatpush3.bf16.msra.mxu0 %v993_v52 }
  0x6d   :  { %895 = vmatprep.subr.bf16.mxu0 %v994_v55 }
  0x6e   :  { %929 = vmatpush3.bf16.msra.mxu1 %v1002_v3 }
  0x6f   :  { %930 = vmatprep.subr.bf16.mxu1 %v1110_v44 }
  0x70   :  { %896 = vmatpush3.bf16.msra.mxu0 %v995_v59 }
  0x71   :  { %897 = vmatprep.subr.bf16.mxu0 %v996_v60 }
  0x72   :  { %931 = vmatpush3.bf16.msra.mxu1 %v1003_v4 }
  0x73   :  { %932 = vmatprep.subr.bf16.mxu1 %v1110_v44 }
  0x74   :  { %898 = vmatpush3.bf16.msra.mxu0 %v997_v61 }
  0x76   :  { %933 = vmatpush3.bf16.msra.mxu1 %v1004_v5 }
  0x77   :  { %591 = vmatmul.mubr.bf16.vlgmr.msra.gmra.mrb[4].mxu0 %v72_v63  ;;  %934 = vmatprep.subr.bf16.mxu1 %v1110_v44 }
  0x7a   :  { %935 = vmatpush3.bf16.msra.mxu1 %v1005_v6 }
  0x7b   :  { %936 = vmatprep.subr.bf16.mxu1 %v1110_v44 }
  0x7e   :  { %937 = vmatpush3.bf16.msra.mxu1 %v1006_v7 }
 0x12a   :  { %v855_v8 = vpop.f32.mrb[0].mxu0 }
 0x12b   :  { %v856_v10 = vpop.f32.mrb[1].mxu0 }
 0x12c   :  { %v857_v11 = vadd.f32 %v856_v10, %v855_v8  ;;  %v858_v12 = vpop.f32.mrb[2].mxu0  ;;  %v877_v13 = vpop.f32.mrb[0].mxu1 }
 0x12d   :  { %v859_v14 = vpop.f32.mrb[3].mxu0  ;;  %v878_v16 = vpop.f32.mrb[1].mxu1 }
 0x12e   :  { %v513_v15 = vadd.f32 %v857_v11, %v779_v9  ;;  %v879_v17 = vadd.f32 %v878_v16, %v877_v13  ;;  %v880_v18 = vpop.f32.mrb[2].mxu1 }
 0x12f   :  { %v881_v19 = vpop.f32.mrb[3].mxu1 }
 0x130   :  { %v553_v20 = vadd.f32 %v879_v17, %v513_v15 }
 0x134   :  { %v632_v21 = vpop.f32.mrb[4].mxu1 }
 0x135   :  { %v920_v22 = vpop.f32.mrb[5].mxu1 }
 0x136   :  { %v635_v23 = vpop.f32.mrb[6].mxu1 }
 0x137   :  { %v921_v24 = vpop.f32.mrb[7].mxu1 }
 0x14a   :  { %v899_v25 = vpop.f32.mrb[4].mxu0 }
 0x14b   :  { %v900_v26 = vpop.f32.mrb[5].mxu0 }
 0x14c   :  { %v901_v27 = vadd.f32 %v900_v26, %v899_v25  ;;  %v902_v28 = vpop.f32.mrb[6].mxu0 }
 0x14d   :  { %v903_v29 = vpop.f32.mrb[7].mxu0 }
 0x14e   :  { %v593_v30 = vadd.f32 %v901_v27, %v553_v20 }
 0x150   :  { %v633_v31 = vadd.f32 %v632_v21, %v593_v30 }
 0x152   :  { %v638_v32 = vmax.f32 %v633_v31, 0.0 }
 0x154   :  { %v639_v33 = vpack.c.bf16 %v638_v32, %v638_v32 }
 0x156   :  { %939 = vmatmul.mubr.bf16.vlgmr.msra.gmra.mrb[8].mxu1 %v639_v33 }
 0x229   :  { %v745_v35 = vpop.f32.mrb[8].mxu1 }
 0x22a   :  { %v746_v36 = vadd.f32 %v830_v34, %v745_v35  ;;  %v940_v37 = vpop.f32.mrb[9].mxu1 }
 0x22b   :  { %v748_v38 = vpop.f32.mrb[10].mxu1 }
 0x22c   :  { %751 = vmax.xlane.f32.xlu0 %v746_v36  ;;  %v941_v39 = vpop.f32.mrb[11].mxu1 }
 0x2b9   :  { %v752_v40 = vpop.xlane.xlu0 %751 }
 0x2ba   :  { %v753_v41 = vsub.f32 %v746_v36, %v752_v40 }
 0x2bc   :  { %v754_v42 = vmul.f32 1.442695, %v753_v41 }
 0x2be   :  { %1007 = vpow2.f32 %v754_v42 }
 0x2c8   :  { %v1008_v43 = vpop.eup %1007 }
 0x2c9   :  { %756 = vadd.xlane.f32.xlu0 %v1008_v43 }
 0x356   :  { %v757_v44 = vpop.xlane.xlu0 %756 }
 0x357   :  { %1009 = vlog2.f32 %v757_v44 }
 0x361   :  { %v1010_v45 = vpop.eup %1009 }
 0x362   :  { %v759_v46 = vmul.f32 0.6931472, %v1010_v45 }
 0x364   :  { %v760_v47 = vsub.f32 %v753_v41, %v759_v46 }
 0x366   :  { %762 = vst.msk [vmem:[#allocation8] sm:$0xff] %vm761_vm2, %v760_v47 }
 0x367   :  { %1088 = shalt.err (!%p1085_p0)
}
 0x368   :  { %s1089_s10 = scalar_lea.hbm %s1221_s5, 128 }
 0x369   :  { %p1090_p1 = scmp.ne.s32.totalorder %s1221_s5, %s1089_s10  ;;  %p1093_p2 = scmp.lt.u32.totalorder %s1089_s10, %s1221_s5 }
 0x36b   :  { %p1095_p3 = pnand %p1093_p2, %p1090_p1 }
 0x36d   :  { %1098 = shalt.err (!%p1095_p3)
}
 0x36e   :  { %772 = dma.vmem_to_hbm [thread:$0]  %s770_s7, 128, %s1221_s5, [#allocation4]  }
 0x36f   :  { %1103 = dma.done.wait [#allocation4], 128  }
 0x370   :  { %1104 = vsyncadd [#allocation4], 4294967168 }
 0x371   :  { %776 = vsyncpa [#allocation3], 1 }
 0x372   :  { %777 = vsyncpa [#allocation6], 1 }
 0x373   :  { %778 = vsyncpa [#allocation4], 1 }

</bundles_post_ra>
